<compile_context>
chip_gen: v7x
topology: tpu7x:2x2x1
jax: 0.10.0
libtpu: 0.0.40
codegen_flags: <defaults>
</compile_context>

<pallas_src>
import math

import jax
import jax.numpy as jnp
from jax.experimental import pallas as pl
from jax.experimental.pallas import tpu as pltpu

_RW, _GW, _BW = 0.299, 0.587, 0.114


def _round_up(x, m):
    return ((x + m - 1) // m) * m


def _vmem_capacity_bytes():
    try:
        return int(getattr(pltpu.get_tpu_info(), "vmem_capacity_bytes", 64 << 20))
    except Exception:
        return 64 << 20  # conservative fallback: v7x physical VMEM


# ----------------------------------------------------------------------------
# Pallas kernel 1: fused grayscale (+ optional mask) + Laplacian^2 response.
# Grid = (B, T) over batch and H-tiles.  Halo rows come from two extra 8-row
# BlockSpecs on the image itself (clamped block index).  Outputs: response and
# the gray plane (reused by the descriptor path).
# ----------------------------------------------------------------------------
def _make_response_kernel(C, Ht, Wp, H, W, has_mask):
    def kernel(*refs):
        if has_mask:
            img_ref, top_ref, bot_ref, mask_ref, resp_ref, gray_ref = refs
        else:
            img_ref, top_ref, bot_ref, resp_ref, gray_ref = refs
        t = pl.program_id(1)

        blk = img_ref[...][0]                       # (C, Ht, Wp)
        top = top_ref[...][0]                       # (C, 8, Wp): rows t*Ht-8 .. t*Ht-1 (clamped)
        bot = bot_ref[...][0]                       # (C, 8, Wp): rows (t+1)*Ht .. +7   (clamped)
        if C == 3:
            x = _RW * blk[0] + _GW * blk[1] + _BW * blk[2]                      # (Ht, Wp)
            x_top = _RW * top[0, 7:8] + _GW * top[1, 7:8] + _BW * top[2, 7:8]   # (1, Wp)
            x_bot = _RW * bot[0, 0:1] + _GW * bot[1, 0:1] + _BW * bot[2, 0:1]   # (1, Wp)
        else:
            x = blk[0]
            x_top = top[0, 7:8]
            x_bot = bot[0, 0:1]

        lrow = jax.lax.broadcasted_iota(jnp.int32, (Ht, Wp), 0)
        col = jax.lax.broadcasted_iota(jnp.int32, (Ht, Wp), 1)

        # Vertical neighbours: sublane rolls (XLU slot) + single-row fix-up from the halo rows.
        up = jnp.where(lrow == 0, x_top, pltpu.roll(x, 1, 0))               # row r -> x[r-1]
        down = jnp.where(lrow == Ht - 1, x_bot, pltpu.roll(x, Ht - 1, 0))   # row r -> x[r+1]
        # Horizontal neighbours: lane rolls; wrap / padded columns are masked below.
        lr = pltpu.roll(x, 1, 1) + pltpu.roll(x, Wp - 1, 1)
        lap = up + down + lr - 4.0 * x

        grow = lrow + t * Ht                        # global row index
        valid = (grow >= 1) & (grow < H - 1) & (col >= 1) & (col < W - 1)
        resp = jnp.where(valid, lap * lap, 0.0)
        if has_mask:
            resp = resp * mask_ref[...][0, 0].astype(jnp.float32)
        resp_ref[0] = resp
        gray_ref[0] = x

    return kernel


def _largest_divisor_tile(h, target, g):
    """Largest multiple of g that divides h and is <= target (0 if none exists)."""
    best = 0
    cand = g
    lim = min(target, h)
    while cand <= lim:
        if h % cand == 0:
            best = cand
        cand += g
    return best


def detector_response(img, mask=None, max_tile_rows=512):
    """img: (B,C,H,W); mask: (B,C,H,W) or None -> (response (B,H,W) f32, gray (B,H,W) f32)."""
    B, C, H, W = img.shape
    img = img.astype(jnp.float32)
    has_mask = mask is not None
    g = 16 if has_mask else 8                      # sublane granularity (bf16 mask tile wants 16)
    Wp = _round_up(W, 128)                         # lane-dense output stores

    # --- VMEM-aware tile-row budget (size Ht from W and per-chip VMEM, not a fixed constant) ---
    cap = _vmem_capacity_bytes()
    per_row = Wp * 4 * (C + 2) + (Wp * 2 if has_mask else 0)   # C img planes + resp + gray (+mask)
    halo_bytes = 2 * C * 8 * Wp * 4
    budget = min(int(cap * 0.45), 48 << 20)                    # headroom (v7x physical = 64 MiB)
    rows_fit = max(g, (budget // 2 - halo_bytes) // per_row)   # //2: double-buffered blocks
    target = max(g, (min(int(max_tile_rows), int(rows_fit)) // g) * g)

    # Keep the grid >= 2 steps when B == 1 so both v7x TensorCores get work.
    if B == 1:
        half = max(g, ((_round_up(H, g) // 2) // g) * g)
        target = min(target, half)

    Ht = _largest_divisor_tile(H, target, g)
    if Ht == 0 or (Ht < 64 and target >= 2 * Ht and H > target):
        # No (good) divisor of H: pad H up to a multiple of a full-size tile instead of silently
        # falling back to an untiled full-plane kernel (VMEM risk on wide images / v7x).
        Ht = min(target, _round_up(H, g))
        Hp = _round_up(H, Ht)
    else:
        Hp = H
    T = Hp // Ht

    if (Hp != H) or (Wp != W):
        img = jnp.pad(img, ((0, 0), (0, 0), (0, Hp - H), (0, Wp - W)))
    nblk8 = Hp // 8                                # halo blocks are 8 rows each

    in_specs = [
        pl.BlockSpec((1, C, Ht, Wp), lambda b, t: (b, 0, t, 0)),
        # 8-row halo blocks straight from the image (clamped block index);
        # row 7 of the top block / row 0 of the bottom block are the actual halo rows.
        pl.BlockSpec((1, C, 8, Wp),
                     lambda b, t: (b, 0, jnp.maximum(t * (Ht // 8) - 1, 0), 0)),
        pl.BlockSpec((1, C, 8, Wp),
                     lambda b, t: (b, 0, jnp.minimum((t + 1) * (Ht // 8), nblk8 - 1), 0)),
    ]
    args = [img, img, img]
    if has_mask:
        m = mask[:, 0:1].astype(jnp.bfloat16)      # bf16 mask: halves mask HBM traffic
        if (Hp != H) or (Wp != W):
            m = jnp.pad(m, ((0, 0), (0, 0), (0, Hp - H), (0, Wp - W)))
        in_specs.append(pl.BlockSpec((1, 1, Ht, Wp), lambda b, t: (b, 0, t, 0)))
        args.append(m)

    blk_bytes = C * Ht * Wp * 4
    mask_bytes = Ht * Wp * 2 if has_mask else 0
    out_bytes = 2 * Ht * Wp * 4
    needed = 2 * (blk_bytes + halo_bytes + mask_bytes + out_bytes)   # double-buffered footprint
    vmem_limit = int(min(max(needed + (4 << 20), 32 << 20), max(cap - (8 << 20), 32 << 20)))

    resp_p, gray_p = pl.pallas_call(
        _make_response_kernel(C, Ht, Wp, H, W, has_mask),
        out_shape=(jax.ShapeDtypeStruct((B, Hp, Wp), jnp.float32),
                   jax.ShapeDtypeStruct((B, Hp, Wp), jnp.float32)),
        grid=(B, T),
        in_specs=in_specs,
        out_specs=(pl.BlockSpec((1, Ht, Wp), lambda b, t: (b, t, 0)),
                   pl.BlockSpec((1, Ht, Wp), lambda b, t: (b, t, 0))),
        compiler_params=pltpu.CompilerParams(
            dimension_semantics=("parallel", "parallel"),
            vmem_limit_bytes=vmem_limit),
    )(*args)
    # Crops are no-ops when no padding was applied.
    return resp_p[:, :H, :W], gray_p[:, :H, :W]


# ----------------------------------------------------------------------------
# Pallas kernel 2: patch descriptor ("HardNet-lite"): bf16 MXU matmul + f32 L2 norm.
# ----------------------------------------------------------------------------
def _descriptor_kernel(p_ref, w_ref, o_ref):
    d = jnp.dot(p_ref[...], w_ref[...], preferred_element_type=jnp.float32)   # f32 accumulation
    n = jnp.sum(d * d, axis=-1, keepdims=True)
    o_ref[...] = (d * jax.lax.rsqrt(n + 1e-10)).astype(o_ref.dtype)


def _default_desc_tile_m():
    # v5e MXU is 128x128 (TM=128 saturates it); v6e / v7x MXUs are 256-wide -> TM=256.
    try:
        ver = str(getattr(pltpu.get_tpu_info(), "chip_version", "")).lower()
        if "5" in ver:
            return 128
    except Exception:
        pass
    return 256


def patch_descriptor(patches_flat, w, tile_m=None, min_pallas_rows=1024):
    """patches_flat: (BN, K), w: (K, D) -> L2-normalized descriptors (BN, D) f32."""
    BN, K = patches_flat.shape
    D = w.shape[1]
    p = patches_flat.astype(jnp.bfloat16)          # halve patch DMA traffic; bf16 MXU path
    wb = w.astype(jnp.bfloat16)
    if BN < min_pallas_rows:
        # Tiny BN (e.g. default 8 keypoints): pallas launch/DMA overhead dominates -> plain XLA.
        d = jnp.dot(p, wb, preferred_element_type=jnp.float32)
        n = jnp.sum(d * d, axis=-1, keepdims=True)
        return d * jax.lax.rsqrt(n + 1e-10)

    TM = int(tile_m) if tile_m is not None else _default_desc_tile_m()
    BNp = _round_up(BN, TM)
    if BNp != BN:
        p = jnp.pad(p, ((0, BNp - BN), (0, 0)))
    out = pl.pallas_call(
        _descriptor_kernel,
        out_shape=jax.ShapeDtypeStruct((BNp, D), jnp.float32),
        grid=(BNp // TM,),
        in_specs=[
            pl.BlockSpec((TM, K), lambda i: (i, 0)),
            pl.BlockSpec((K, D), lambda i: (0, 0)),    # weights stay VMEM-resident across the grid
        ],
        out_specs=pl.BlockSpec((TM, D), lambda i: (i, 0)),
        compiler_params=pltpu.CompilerParams(dimension_semantics=("parallel",)),
    )(p, wb)
    return out[:BN]


# ----------------------------------------------------------------------------
# Plain-JAX pieces (XLA fuses these; no clean Pallas win)
# ----------------------------------------------------------------------------
def scale_laf(lafs, coef):
    """lafs: (B,N,2,3) -> 2x2 part scaled by coef, translation untouched."""
    coef = float(coef)
    return jnp.concatenate([lafs[..., :2] * coef, lafs[..., 2:]], axis=-1)


def rgb_to_grayscale(img):
    return _RW * img[:, 0] + _GW * img[:, 1] + _BW * img[:, 2]


def _bilinear_sample(gray, xs, ys):
    """gray: (B,H,W); xs/ys: (B,N,PS,PS) pixel coords -> samples."""
    B, H, W = gray.shape
    x0 = jnp.clip(jnp.floor(xs), 0.0, W - 2.0)
    y0 = jnp.clip(jnp.floor(ys), 0.0, H - 2.0)
    wx = jnp.clip(xs - x0, 0.0, 1.0)
    wy = jnp.clip(ys - y0, 0.0, 1.0)
    x0i = x0.astype(jnp.int32)
    y0i = y0.astype(jnp.int32)
    flat = gray.reshape(B, H * W)
    gather = jax.vmap(lambda f, idx: f[idx])
    v00 = gather(flat, y0i * W + x0i)
    v01 = gather(flat, y0i * W + x0i + 1)
    v10 = gather(flat, (y0i + 1) * W + x0i)
    v11 = gather(flat, (y0i + 1) * W + x0i + 1)
    return (v00 * (1.0 - wx) * (1.0 - wy) + v01 * wx * (1.0 - wy)
            + v10 * (1.0 - wx) * wy + v11 * wx * wy)


def extract_patches(gray, lafs, patch_size):
    """Simplified extract_patches_from_pyramid: (B,H,W), (B,N,2,3) -> (B,N,1,PS,PS)."""
    # TODO(synk): kornia builds an image pyramid and samples the level matching the LAF scale;
    # here we sample directly from the full-resolution plane.
    B, N = lafs.shape[0], lafs.shape[1]
    PS = patch_size
    lin = jnp.linspace(-1.0, 1.0, PS)
    gy, gx = jnp.meshgrid(lin, lin, indexing="ij")
    grid = jnp.stack([gx, gy, jnp.ones_like(gx)], axis=-1)      # (PS, PS, 3)
    coords = jnp.einsum("bnij,pqj->bnpqi", lafs, grid)          # (B,N,PS,PS,2) -> (x, y)
    patches = _bilinear_sample(gray, coords[..., 0], coords[..., 1])
    return patches.reshape(B, N, 1, PS, PS)


class LocalFeature:
    """Synthetic LocalFeature: detector + scale_laf + LAFDescriptor(HardNet-lite)."""

    def __init__(self, num_keypoints=8, patch_size=32, desc_dim=128,
                 scaling_coef=1.0, keypoint_scale=6.0, detector_tile_rows=512):
        if scaling_coef <= 0:
            raise ValueError(f"Scaling coef should be >= 0, got {scaling_coef}")
        self.num_keypoints = num_keypoints
        self.patch_size = patch_size
        self.desc_dim = desc_dim
        self.scaling_coef = scaling_coef
        self.keypoint_scale = keypoint_scale
        self.detector_tile_rows = detector_tile_rows
        k = patch_size * patch_size
        self.w_desc = (jax.random.normal(jax.random.PRNGKey(1), (k, desc_dim), jnp.float32)
                       / math.sqrt(k))

    # ----- detector -----
    def _detect(self, img, mask=None):
        B, C, H, W = img.shape
        resp, gray = detector_response(img.astype(jnp.float32), mask,
                                       max_tile_rows=self.detector_tile_rows)
        flat = resp.reshape(B, H * W)
        vals, idx = jax.lax.top_k(flat, self.num_keypoints)    # data-dependent: JAX glue
        ys = (idx // W).astype(jnp.float32)
        xs = (idx % W).astype(jnp.float32)
        zeros = jnp.zeros_like(xs)
        scale = jnp.full_like(xs, self.keypoint_scale)
        row0 = jnp.stack([scale, zeros, xs], axis=-1)
        row1 = jnp.stack([zeros, scale, ys], axis=-1)
        lafs = jnp.stack([row0, row1], axis=-2)                # (B,N,2,3)
        return lafs, vals[..., None], gray

    def detect(self, img, mask=None):
        lafs, responses, _ = self._detect(img, mask)
        return lafs, responses

    # ----- descriptor -----
    def _describe_from_gray(self, gray, lafs):
        B = gray.shape[0]
        N = lafs.shape[1]
        PS = self.patch_size
        patches = extract_patches(gray.astype(jnp.float32), lafs, PS)
        patches_flat = patches.reshape(B * N, PS * PS)
        descs = patch_descriptor(patches_flat, self.w_desc)
        return descs.reshape(B, N, self.desc_dim)

    def describe(self, img, lafs):
        C = img.shape[1]
        gray = rgb_to_grayscale(img.astype(jnp.float32)) if C == 3 else img[:, 0]
        return self._describe_from_gray(gray, lafs)

    def __call__(self, img, mask=None):
        lafs, responses, gray = self._detect(img, mask)        # gray reused: no image re-read
        lafs = scale_laf(lafs, self.scaling_coef)              # plain JAX (XLA fuses)
        descs = self._describe_from_gray(gray, lafs)
        return lafs, responses, descs


if __name__ == "__main__":
    key = jax.random.PRNGKey(0)
    B, C, H, W = 2, 3, 64, 64
    kimg, kmask, kpat = jax.random.split(key, 3)
    img = jax.random.uniform(kimg, (B, C, H, W), dtype=jnp.float32)

    # --- pure-JAX reference for the fused detector kernel ---
    def ref_gray(x):
        return _RW * x[:, 0] + _GW * x[:, 1] + _BW * x[:, 2]

    def ref_response(x, m=None):
        gray = ref_gray(x)
        lap = (jnp.roll(gray, 1, 1) + jnp.roll(gray, -1, 1)
               + jnp.roll(gray, 1, 2) + jnp.roll(gray, -1, 2) - 4.0 * gray)
        resp = lap * lap
        rr = jnp.arange(H)[None, :, None]
        cc = jnp.arange(W)[None, None, :]
        valid = (rr >= 1) & (rr < H - 1) & (cc >= 1) & (cc < W - 1)
        resp = jnp.where(valid, resp, 0.0)
        if m is not None:
            resp = resp * m[:, 0]
        return resp

    ref_r = ref_response(img)
    ref_g = ref_gray(img)

    r_tiled, g_tiled = detector_response(img, max_tile_rows=32)     # T=2 halo path (W padded to 128)
    r_full, g_full = detector_response(img, max_tile_rows=4096)     # T=1 full-plane path
    jax.block_until_ready((r_tiled, g_tiled, r_full, g_full))
    assert jnp.allclose(r_tiled, ref_r, rtol=1e-4, atol=1e-5)
    assert jnp.allclose(r_full, ref_r, rtol=1e-4, atol=1e-5)
    assert jnp.allclose(g_tiled, ref_g, rtol=1e-5, atol=1e-6)
    assert jnp.allclose(g_full, ref_g, rtol=1e-5, atol=1e-6)

    # --- masked path (binary mask, bf16 inside the kernel) ---
    mask = (jax.random.uniform(kmask, (B, C, H, W)) > 0.5).astype(jnp.float32)
    r_mask, _ = detector_response(img, mask, max_tile_rows=32)
    jax.block_until_ready(r_mask)
    assert jnp.allclose(r_mask, ref_response(img, mask), rtol=1e-4, atol=1e-5)

    # --- Pallas descriptor path (large BN) vs plain-XLA path ---
    BNbig, K, D = 2048, 32 * 32, 128
    pat = jax.random.normal(kpat, (BNbig, K), jnp.float32)
    wd = jax.random.normal(jax.random.PRNGKey(1), (K, D), jnp.float32) / math.sqrt(K)
    d_pallas = patch_descriptor(pat, wd, min_pallas_rows=1)           # force Pallas path
    d_ref = patch_descriptor(pat, wd, min_pallas_rows=BNbig + 1)      # plain-XLA path
    jax.block_until_ready((d_pallas, d_ref))
    assert jnp.allclose(d_pallas, d_ref, rtol=1e-2, atol=1e-2)
    assert jnp.allclose(jnp.linalg.norm(d_pallas, axis=-1), 1.0, atol=1e-3)

    # --- full pipeline ---
    lf = LocalFeature(num_keypoints=8, patch_size=32, desc_dim=128,
                      scaling_coef=1.5, detector_tile_rows=32)
    lafs, responses, descs = lf(img)
    jax.block_until_ready((lafs, responses, descs))
    assert lafs.shape == (B, 8, 2, 3) and lafs.dtype == jnp.float32
    assert responses.shape == (B, 8, 1)
    assert descs.shape == (B, 8, 128)
    assert jnp.allclose(jnp.linalg.norm(descs, axis=-1), 1.0, atol=1e-3)

    # mask of ones must not change responses
    ones = jnp.ones((B, C, H, W), jnp.float32)
    lafs_m, responses_m, descs_m = lf(img, ones)
    jax.block_until_ready((lafs_m, responses_m, descs_m))
    assert jnp.allclose(responses_m, responses, rtol=1e-5, atol=1e-6)

    print("KERNEL_OK")
</pallas_src>

<mosaic_0001>
module attributes {stable_mosaic.version = 11 : i64} {
  func.func @kernel(%arg0: i32, %arg1: i32, %arg2: memref<1x3x32x128xf32, #tpu.memory_space<vmem>>, %arg3: memref<1x3x8x128xf32, #tpu.memory_space<vmem>>, %arg4: memref<1x3x8x128xf32, #tpu.memory_space<vmem>>, %arg5: memref<1x32x128xf32, #tpu.memory_space<vmem>>, %arg6: memref<1x32x128xf32, #tpu.memory_space<vmem>>) attributes {dimension_semantics = [#tpu.dimension_semantics<parallel>, #tpu.dimension_semantics<parallel>], iteration_bounds = array<i64: 2, 2>, scalar_prefetch = 0 : i64, scratch_operands = 0 : i64, tpu.core_type = #tpu.core_type<tc>, window_params = [{transform_indices = @transform_0, window_bounds = array<i64: 1, 3, 32, 128>}, {transform_indices = @transform_1, window_bounds = array<i64: 1, 3, 8, 128>}, {transform_indices = @transform_2, window_bounds = array<i64: 1, 3, 8, 128>}, {transform_indices = @transform_3, window_bounds = array<i64: 1, 32, 128>}, {transform_indices = @transform_4, window_bounds = array<i64: 1, 32, 128>}]} {
    %c0 = arith.constant 0 : index
    %c0_0 = arith.constant 0 : index
    %c0_1 = arith.constant 0 : index
    %c0_2 = arith.constant 0 : index
    %0 = vector.load %arg2[%c0, %c0_0, %c0_1, %c0_2] : memref<1x3x32x128xf32, #tpu.memory_space<vmem>>, vector<1x3x32x128xf32>
    %1 = vector.shape_cast %0 : vector<1x3x32x128xf32> to vector<3x32x128xf32>
    %c0_3 = arith.constant 0 : index
    %c0_4 = arith.constant 0 : index
    %c0_5 = arith.constant 0 : index
    %c0_6 = arith.constant 0 : index
    %2 = vector.load %arg3[%c0_3, %c0_4, %c0_5, %c0_6] : memref<1x3x8x128xf32, #tpu.memory_space<vmem>>, vector<1x3x8x128xf32>
    %3 = vector.shape_cast %2 : vector<1x3x8x128xf32> to vector<3x8x128xf32>
    %c0_7 = arith.constant 0 : index
    %c0_8 = arith.constant 0 : index
    %c0_9 = arith.constant 0 : index
    %c0_10 = arith.constant 0 : index
    %4 = vector.load %arg4[%c0_7, %c0_8, %c0_9, %c0_10] : memref<1x3x8x128xf32, #tpu.memory_space<vmem>>, vector<1x3x8x128xf32>
    %5 = vector.shape_cast %4 : vector<1x3x8x128xf32> to vector<3x8x128xf32>
    %6 = vector.extract_strided_slice %1 {offsets = [0, 0, 0], sizes = [1, 32, 128], strides = [1, 1, 1]} : vector<3x32x128xf32> to vector<1x32x128xf32>
    %7 = vector.shape_cast %6 : vector<1x32x128xf32> to vector<32x128xf32>
    %cst = arith.constant 2.990000e-01 : f32
    %8 = vector.broadcast %cst : f32 to vector<32x128xf32>
    %9 = arith.mulf %8, %7 : vector<32x128xf32>
    %10 = vector.extract_strided_slice %1 {offsets = [1, 0, 0], sizes = [1, 32, 128], strides = [1, 1, 1]} : vector<3x32x128xf32> to vector<1x32x128xf32>
    %11 = vector.shape_cast %10 : vector<1x32x128xf32> to vector<32x128xf32>
    %cst_11 = arith.constant 5.870000e-01 : f32
    %12 = vector.broadcast %cst_11 : f32 to vector<32x128xf32>
    %13 = arith.mulf %12, %11 : vector<32x128xf32>
    %14 = arith.addf %9, %13 : vector<32x128xf32>
    %15 = vector.extract_strided_slice %1 {offsets = [2, 0, 0], sizes = [1, 32, 128], strides = [1, 1, 1]} : vector<3x32x128xf32> to vector<1x32x128xf32>
    %16 = vector.shape_cast %15 : vector<1x32x128xf32> to vector<32x128xf32>
    %cst_12 = arith.constant 1.140000e-01 : f32
    %17 = vector.broadcast %cst_12 : f32 to vector<32x128xf32>
    %18 = arith.mulf %17, %16 : vector<32x128xf32>
    %19 = arith.addf %14, %18 : vector<32x128xf32>
    %20 = vector.extract_strided_slice %3 {offsets = [0, 7, 0], sizes = [1, 1, 128], strides = [1, 1, 1]} : vector<3x8x128xf32> to vector<1x1x128xf32>
    %21 = vector.shape_cast %20 : vector<1x1x128xf32> to vector<1x128xf32>
    %cst_13 = arith.constant 2.990000e-01 : f32
    %22 = vector.broadcast %cst_13 : f32 to vector<1x128xf32>
    %23 = arith.mulf %22, %21 : vector<1x128xf32>
    %24 = vector.extract_strided_slice %3 {offsets = [1, 7, 0], sizes = [1, 1, 128], strides = [1, 1, 1]} : vector<3x8x128xf32> to vector<1x1x128xf32>
    %25 = vector.shape_cast %24 : vector<1x1x128xf32> to vector<1x128xf32>
    %cst_14 = arith.constant 5.870000e-01 : f32
    %26 = vector.broadcast %cst_14 : f32 to vector<1x128xf32>
    %27 = arith.mulf %26, %25 : vector<1x128xf32>
    %28 = arith.addf %23, %27 : vector<1x128xf32>
    %29 = vector.extract_strided_slice %3 {offsets = [2, 7, 0], sizes = [1, 1, 128], strides = [1, 1, 1]} : vector<3x8x128xf32> to vector<1x1x128xf32>
    %30 = vector.shape_cast %29 : vector<1x1x128xf32> to vector<1x128xf32>
    %cst_15 = arith.constant 1.140000e-01 : f32
    %31 = vector.broadcast %cst_15 : f32 to vector<1x128xf32>
    %32 = arith.mulf %31, %30 : vector<1x128xf32>
    %33 = arith.addf %28, %32 : vector<1x128xf32>
    %34 = vector.extract_strided_slice %5 {offsets = [0, 0, 0], sizes = [1, 1, 128], strides = [1, 1, 1]} : vector<3x8x128xf32> to vector<1x1x128xf32>
    %35 = vector.shape_cast %34 : vector<1x1x128xf32> to vector<1x128xf32>
    %cst_16 = arith.constant 2.990000e-01 : f32
    %36 = vector.broadcast %cst_16 : f32 to vector<1x128xf32>
    %37 = arith.mulf %36, %35 : vector<1x128xf32>
    %38 = vector.extract_strided_slice %5 {offsets = [1, 0, 0], sizes = [1, 1, 128], strides = [1, 1, 1]} : vector<3x8x128xf32> to vector<1x1x128xf32>
    %39 = vector.shape_cast %38 : vector<1x1x128xf32> to vector<1x128xf32>
    %cst_17 = arith.constant 5.870000e-01 : f32
    %40 = vector.broadcast %cst_17 : f32 to vector<1x128xf32>
    %41 = arith.mulf %40, %39 : vector<1x128xf32>
    %42 = arith.addf %37, %41 : vector<1x128xf32>
    %43 = vector.extract_strided_slice %5 {offsets = [2, 0, 0], sizes = [1, 1, 128], strides = [1, 1, 1]} : vector<3x8x128xf32> to vector<1x1x128xf32>
    %44 = vector.shape_cast %43 : vector<1x1x128xf32> to vector<1x128xf32>
    %cst_18 = arith.constant 1.140000e-01 : f32
    %45 = vector.broadcast %cst_18 : f32 to vector<1x128xf32>
    %46 = arith.mulf %45, %44 : vector<1x128xf32>
    %47 = arith.addf %42, %46 : vector<1x128xf32>
    %48 = tpu.iota {dimensions = array<i32: 0>} : vector<32x128xi32>
    %49 = tpu.iota {dimensions = array<i32: 1>} : vector<32x128xi32>
    %c0_i32 = arith.constant 0 : i32
    %50 = vector.broadcast %c0_i32 : i32 to vector<32x128xi32>
    %51 = arith.cmpi eq, %48, %50 : vector<32x128xi32>
    %c1_i32 = arith.constant 1 : i32
    %52 = tpu.dynamic_rotate %19 by %c1_i32 dim 0 : vector<32x128xf32>, i32 -> vector<32x128xf32>
    %53 = vector.shape_cast %33 : vector<1x128xf32> to vector<1x128xf32>
    %54 = vector.broadcast %53 : vector<1x128xf32> to vector<32x128xf32>
    %55 = arith.select %51, %54, %52 : vector<32x128xi1>, vector<32x128xf32>
    %c31_i32 = arith.constant 31 : i32
    %56 = vector.broadcast %c31_i32 : i32 to vector<32x128xi32>
    %57 = arith.cmpi eq, %48, %56 : vector<32x128xi32>
    %c31_i32_19 = arith.constant 31 : i32
    %58 = tpu.dynamic_rotate %19 by %c31_i32_19 dim 0 : vector<32x128xf32>, i32 -> vector<32x128xf32>
    %59 = vector.shape_cast %47 : vector<1x128xf32> to vector<1x128xf32>
    %60 = vector.broadcast %59 : vector<1x128xf32> to vector<32x128xf32>
    %61 = arith.select %57, %60, %58 : vector<32x128xi1>, vector<32x128xf32>
    %c1_i32_20 = arith.constant 1 : i32
    %62 = tpu.dynamic_rotate %19 by %c1_i32_20 dim 1 : vector<32x128xf32>, i32 -> vector<32x128xf32>
    %c127_i32 = arith.constant 127 : i32
    %63 = tpu.dynamic_rotate %19 by %c127_i32 dim 1 : vector<32x128xf32>, i32 -> vector<32x128xf32>
    %64 = arith.addf %62, %63 : vector<32x128xf32>
    %65 = arith.addf %55, %61 : vector<32x128xf32>
    %66 = arith.addf %65, %64 : vector<32x128xf32>
    %cst_21 = arith.constant 4.000000e+00 : f32
    %67 = vector.broadcast %cst_21 : f32 to vector<32x128xf32>
    %68 = arith.mulf %67, %19 : vector<32x128xf32>
    %69 = arith.subf %66, %68 : vector<32x128xf32>
    %c32_i32 = arith.constant 32 : i32
    %70 = arith.muli %arg1, %c32_i32 : i32
    %71 = vector.broadcast %70 : i32 to vector<32x128xi32>
    %72 = arith.addi %48, %71 : vector<32x128xi32>
    %c1_i32_22 = arith.constant 1 : i32
    %73 = vector.broadcast %c1_i32_22 : i32 to vector<32x128xi32>
    %74 = arith.cmpi sge, %72, %73 : vector<32x128xi32>
    %c63_i32 = arith.constant 63 : i32
    %75 = vector.broadcast %c63_i32 : i32 to vector<32x128xi32>
    %76 = arith.cmpi slt, %72, %75 : vector<32x128xi32>
    %77 = arith.andi %74, %76 : vector<32x128xi1>
    %c1_i32_23 = arith.constant 1 : i32
    %78 = vector.broadcast %c1_i32_23 : i32 to vector<32x128xi32>
    %79 = arith.cmpi sge, %49, %78 : vector<32x128xi32>
    %80 = arith.andi %77, %79 : vector<32x128xi1>
    %c63_i32_24 = arith.constant 63 : i32
    %81 = vector.broadcast %c63_i32_24 : i32 to vector<32x128xi32>
    %82 = arith.cmpi slt, %49, %81 : vector<32x128xi32>
    %83 = arith.andi %80, %82 : vector<32x128xi1>
    %84 = arith.mulf %69, %69 : vector<32x128xf32>
    %cst_25 = arith.constant 0.000000e+00 : f32
    %85 = vector.broadcast %cst_25 : f32 to vector<32x128xf32>
    %86 = arith.select %83, %84, %85 : vector<32x128xi1>, vector<32x128xf32>
    %c0_26 = arith.constant 0 : index
    %c0_27 = arith.constant 0 : index
    %c0_28 = arith.constant 0 : index
    %87 = vector.load %arg5[%c0_26, %c0_27, %c0_28] : memref<1x32x128xf32, #tpu.memory_space<vmem>>, vector<1x32x128xf32>
    %88 = vector.shape_cast %87 : vector<1x32x128xf32> to vector<32x128xf32>
    %89 = vector.shape_cast %86 : vector<32x128xf32> to vector<1x32x128xf32>
    tpu.vector_store %arg5[%c0_26, %c0_27, %c0_28], %89 {strides = array<i32>} : memref<1x32x128xf32, #tpu.memory_space<vmem>>, vector<1x32x128xf32>,
    %c0_29 = arith.constant 0 : index
    %c0_30 = arith.constant 0 : index
    %c0_31 = arith.constant 0 : index
    %90 = vector.load %arg6[%c0_29, %c0_30, %c0_31] : memref<1x32x128xf32, #tpu.memory_space<vmem>>, vector<1x32x128xf32>
    %91 = vector.shape_cast %90 : vector<1x32x128xf32> to vector<32x128xf32>
    %92 = vector.shape_cast %19 : vector<32x128xf32> to vector<1x32x128xf32>
    tpu.vector_store %arg6[%c0_29, %c0_30, %c0_31], %92 {strides = array<i32>} : memref<1x32x128xf32, #tpu.memory_space<vmem>>, vector<1x32x128xf32>,
    return
  }
  func.func @transform_0(%arg0: i32, %arg1: i32) -> (i32, i32, i32, i32) {
    %c0_i32 = arith.constant 0 : i32
    %c0_i32_0 = arith.constant 0 : i32
    %c0_i32_1 = arith.constant 0 : i32
    return %arg0, %c0_i32, %arg1, %c0_i32_0 : i32, i32, i32, i32
  }
  func.func @transform_1(%arg0: i32, %arg1: i32) -> (i32, i32, i32, i32) {
    %c4_i32 = arith.constant 4 : i32
    %0 = arith.muli %arg1, %c4_i32 : i32
    %c1_i32 = arith.constant 1 : i32
    %1 = arith.subi %0, %c1_i32 : i32
    %c0_i32 = arith.constant 0 : i32
    %2 = arith.maxsi %1, %c0_i32 : i32
    %c0_i32_0 = arith.constant 0 : i32
    %c0_i32_1 = arith.constant 0 : i32
    %c0_i32_2 = arith.constant 0 : i32
    return %arg0, %c0_i32_0, %2, %c0_i32_1 : i32, i32, i32, i32
  }
  func.func @transform_2(%arg0: i32, %arg1: i32) -> (i32, i32, i32, i32) {
    %c1_i32 = arith.constant 1 : i32
    %0 = arith.addi %arg1, %c1_i32 : i32
    %c4_i32 = arith.constant 4 : i32
    %1 = arith.muli %0, %c4_i32 : i32
    %c7_i32 = arith.constant 7 : i32
    %2 = arith.minsi %1, %c7_i32 : i32
    %c0_i32 = arith.constant 0 : i32
    %c0_i32_0 = arith.constant 0 : i32
    %c0_i32_1 = arith.constant 0 : i32
    return %arg0, %c0_i32, %2, %c0_i32_0 : i32, i32, i32, i32
  }
  func.func @transform_3(%arg0: i32, %arg1: i32) -> (i32, i32, i32) {
    %c0_i32 = arith.constant 0 : i32
    %c0_i32_0 = arith.constant 0 : i32
    return %arg0, %arg1, %c0_i32 : i32, i32, i32
  }
  func.func @transform_4(%arg0: i32, %arg1: i32) -> (i32, i32, i32) {
    %c0_i32 = arith.constant 0 : i32
    %c0_i32_0 = arith.constant 0 : i32
    return %arg0, %arg1, %c0_i32 : i32, i32, i32
  }
}

</mosaic_0001>

<bundles_post_ra>
// kernel: tpu_custom_call.1
= control target key start
LH: loop header
LB: loop body
LE: loop exit
PB: predicated region body
PF: predicated region fallthrough
CT: control target
= control target key end

     0   :  { %s1838_s0 = inlined_call_operand.hbm [shape: f32[2,3,64,128], index: 0, kind: input, shape index: {}]   ;;  %s1839_s1 = inlined_call_operand.hbm [shape: f32[2,3,64,128], index: 1, kind: input, shape index: {}]   ;;  %s1840_s2 = inlined_call_operand.hbm [shape: f32[2,3,64,128], index: 2, kind: input, shape index: {}]   ;;  %s1841_s3 = inlined_call_operand.hbm [shape: f32[2,64,128], index: 3, kind: output, shape index: {0}]   ;;  %s1842_s4 = inlined_call_operand.hbm [shape: f32[2,64,128], index: 4, kind: output, shape index: {1}]  }
   0x1   :  { %1866 = sst [smem:[#allocation35_spill]] %s1838_s0 }
   0x2   :  { %1867 = sst [smem:[#allocation36_spill]] %s1841_s3 }
   0x3   :  { %1868 = sst [smem:[#allocation37_spill]] %s1842_s4 }
   0x4   :  { %10 = vsyncpa [#allocation3], 0 }
   0x5   :  { %12 = vsyncpa [#allocation3 + $0x1], 0 }
   0x6   :  { %13 = vsyncpa [#allocation6], 0 }
   0x7   :  { %15 = vsyncpa [#allocation6 + $0x1], 0 }
   0x8   :  { %16 = vsyncpa [#allocation4], 0 }
   0x9   :  { %18 = vsyncpa [#allocation4 + $0x1], 0 }
   0xa   :  { %19 = vsyncpa [#allocation10], 0 }
   0xb   :  { %21 = vsyncpa [#allocation10 + $0x1], 0  ;;  %s1262_s15 = smov 0   ;;  %s1264_s16 = smov 0  }
   0xc   :  { %s1266_s17 = smov 0   ;;  %s1268_s18 = smov 0  }
   0xd   :  { %s1270_s19 = smov 0   ;;  %s1272_s20 = smov 0  }
   0xe   :  { %s1274_s21 = smov 0   ;;  %s1276_s22 = smov 0  }
   0xf   :  { %s1278_s23 = smov 0   ;;  %s1280_s24 = smov 0  }
  0x10   :  { %s1282_s25 = smov 0   ;;  %s1284_s26 = smov 0  }
  0x11   :  { %s1286_s27 = smov 0   ;;  %s1288_s28 = smov 0  }
  0x12 LB: > { %1869 = sst [smem:[#allocation19_spill]] %s1170_s16  ;;  %s1333_s29 = sadd.s32 4294967295, %s1218_s28   ;;  %s1218_s28 = sphi %s1288_s28, %s27_s28   ;;  %s1214_s27 = sphi %s1286_s27, %s1923_s27   ;;  %s1210_s26 = sphi %s1284_s26, %s1935_s26   ;;  %s1206_s25 = sphi %s1282_s25, %s1934_s25   ;;  %s1202_s24 = sphi %s1280_s24, %s1933_s24   ;;  %s1198_s23 = sphi %s1278_s23, %s1932_s23   ;;  %s1194_s22 = sphi %s1276_s22, %s1931_s22   ;;  %s1190_s21 = sphi %s1274_s21, %s1930_s21   ;;  %s1186_s20 = sphi %s1272_s20, %s1929_s20   ;;  %s1182_s19 = sphi %s1270_s19, %s1928_s19   ;;  %s1178_s18 = sphi %s1268_s18, %s1927_s18   ;;  %s1174_s17 = sphi %s1266_s17, %s1926_s17   ;;  %s1170_s16 = sphi %s1264_s16, %s1925_s16   ;;  %s1166_s15 = sphi %s1262_s15, %s1915_s15  }
  0x13   : > { %1870 = sst [smem:[#allocation20_spill]] %s1190_s21  ;;  %s36_s5 = sadd.s32 1, %s1210_s26 }
  0x14   : > { %1871 = sst [smem:[#allocation21_spill]] %s1198_s23  ;;  %s39_s6 = sadd.s32 1, %s1214_s27 }
  0x15   : > { %1872 = sst [smem:[#allocation22_spill]] %s1202_s24  ;;  %p37_p0 = scmp.ge.s32.totalorder %s36_s5, 2 }
  0x16   : > { %1873 = sst [smem:[#allocation23_spill]] %s1206_s25  ;;  %s48_s7 = sadd.s32 1, %s1198_s23 }
  0x17   : > { %1874 = sst [smem:[#allocation24_spill]] %s1210_s26  ;;  %p1849_p1 = scmp.ne.s32.totalorder %s1198_s23, %s1194_s22 }
  0x18   : > { %1875 = sst [smem:[#allocation25_spill]] %s1214_s27  ;;  %p56_p2 = scmp.eq.s32.totalorder %s1218_s28, 0 }
  0x19   : > { %s1937_s5 = smov (%p37_p0, %s36_s5), 0  ;;  %s1939_s6 = smov (!%p37_p0, %s39_s6), %s1214_s27 }
  0x1a   : > { %1876 = sst [smem:[#allocation26_spill]] %s1937_s5  ;;  %s44_s8 = ssub.s32 %s1210_s26, %s1937_s5 }
  0x1b   : > { %p1352_p3 = por %p56_p2, %p1849_p1  ;;  %p41_p4 = scmp.ge.s32.totalorder %s1939_s6, 2 }
  0x1c   : > { %p1848_p5 = scmp.ne.s32.totalorder %s1194_s22, %s1190_s21  ;;  %p62_p6 = scmp.eq.s32.totalorder %s1333_s29, 0 }
  0x1d   : > { %s1360_s10 = sshll.u32 %s1210_s26, 2  ;;  %s1941_s6 = smov (%p41_p4, %s1939_s6), 0 }
  0x1e   : > { %1878 = sst [smem:[#allocation27_spill]] %s1941_s6  ;;  %p1369_p7 = por %p62_p6, %p1848_p5 }
  0x1f   : > { %s781_s12 = sadd.s32 4294967295, %s1360_s10  ;;  %s1376_s13 = ssub.s32 %s1214_s27, %s1941_s6 }
  0x20   : > { %s1879_s11 = scalar_select %p1369_p7, 1, 0 }
  0x21   : > { %p73_p8 = scmp.gt.s32.totalorder %s781_s12, 0  ;;  %s45_s14 = sor.u32 %s44_s8, %s1376_s13 }
  0x22   : > { %s782_s30 = sshll.u32 %s1937_s5, 2  ;;  %p46_p9 = scmp.eq.s32.totalorder %s45_s14, 0 }
  0x23   : > { %s783_s26 = sadd.s32 4294967295, %s782_s30  ;;  %s1943_s12 = smov (!%p73_p8, %s781_s12), 0 }
  0x24   : > { %s1383_s3 = scalar_select %p46_p9, %s1198_s23, %s48_s7  }
  0x25   : > { %p77_p10 = scmp.gt.s32.totalorder %s783_s26, 0  ;;  %s84_s4 = sadd.s32 1, %s1186_s20 }
  0x26   : > { %1880 = sst [smem:[#allocation28_spill]] %s1383_s3  ;;  %p91_p11 = scmp.ne.s32.totalorder %s1186_s20, %s1182_s19 }
  0x27   : > { %p97_p12 = scmp.ne.s32.totalorder %s1182_s19, %s1178_s18  ;;  %s1945_s26 = smov (!%p77_p10, %s783_s26), 0 }
  0x28   : > { %p1392_p13 = por %p91_p11, %p56_p2  ;;  %s80_s14 = ssub.s32 %s1943_s12, %s1945_s26 }
  0x29   : > { %p1398_p0 = por %p97_p12, %p62_p6  ;;  %s812_s6 = sadd.s32 4, %s1360_s10 }
  0x2a   : > { %s81_s5 = sor.u32 %s80_s14, %s1376_s13  ;;  %p109_p4 = scmp.lt.s32.totalorder %s812_s6, 7 }
  0x2b   : > { %s1882_s7 = scalar_select %p1398_p0, 1, 0 }
  0x2c   : > { %p82_p8 = scmp.eq.s32.totalorder %s81_s5, 0  ;;  %s814_s18 = sadd.s32 4, %s782_s30 }
  0x2d   : > { %1883 = sst [smem:[#allocation29_spill]] %s1882_s7  ;;  %s1947_s6 = smov (!%p109_p4, %s812_s6), 7 }
  0x2e   : > { %s1408_s3 = scalar_select %p82_p8, %s1186_s20, %s84_s4  }
  0x2f   : > { %p113_p9 = scmp.lt.s32.totalorder %s814_s18, 7  ;;  %s120_s26 = sadd.s32 1, %s1174_s17 }
  0x30   : > { %1884 = sst [smem:[#allocation30_spill]] %s1408_s3  ;;  %p127_p10 = scmp.ne.s32.totalorder %s1174_s17, %s1170_s16 }
  0x31   : > { %p133_p11 = scmp.ne.s32.totalorder %s1170_s16, %s1166_s15  ;;  %s1949_s18 = smov (!%p113_p9, %s814_s18), 7 }
  0x32   : > { %p1417_p12 = por %p127_p10, %p56_p2  ;;  %s116_s5 = ssub.s32 %s1947_s6, %s1949_s18 }
  0x33   : > { %p1423_p5 = por %p133_p11, %p62_p6  ;;  %p159_p4 = scmp.eq.s32.totalorder %s1333_s29, 3 }
  0x34   : > { %s117_s25 = sor.u32 %s116_s5, %s1376_s13  ;;  %s1888_s4 = sadd.s32 4294967294, %s1218_s28  }
  0x35   : > { %s1886_s30 = scalar_select %p1423_p5, 1, 0 }
  0x36   : > { %p165_p8 = scmp.eq.s32.totalorder %s1888_s4, 3  ;;  %p118_p1 = scmp.eq.s32.totalorder %s117_s25, 0 }
  0x37   : > { %1887 = sst [smem:[#allocation31_spill]] %s1886_s30  ;;  %p1889_p0 = scmp.ne.s32.totalorder %s1198_s23, %s1194_s22 }
  0x38   : > { %p1892_p2 = scmp.ne.s32.totalorder %s1194_s22, %s1190_s21  ;;  %p787_p6 = scmp.ge.s32.totalorder %s1218_s28, 4 }
  0x39   : > { %p1435_p7 = por %p159_p4, %p1889_p0 }
  0x3a   : > { %p1442_p9 = por %p165_p8, %p1892_p2 }
  0x3b   : > { %s1890_s15 = scalar_select %p1435_p7, 1, 0 }
  0x3c   : > { %s1893_s3 = scalar_select %p1442_p9, 1, 0 }
  0x3d   : > { %1891 = sst [smem:[#allocation32_spill]] %s1890_s15  ;;  %209 = sbr.rel (%p787_p6) target bundleno = 135 (0x87), region = 16 }
  0x3e   : > { %1894 = sst [smem:[#allocation33_spill]] %s1893_s3 }
  0x3f   : > { %s1447_s24 = scalar_select %p118_p1, %s1174_s17, %s120_s26  }
  0x41   : > { %1895 = sst [smem:[#allocation34_spill]] %s1447_s24 }
  0x44   : > { %s213_s25 = sand.u32 1, %s1198_s23   ;;  %s1452_s13 = smul.u32 24, %s1214_s27 }
  0x45   : > { %s817_s18 = smul.u32 96, %s213_s25  ;;  %s1896_s0 = sld [smem:[#allocation35_spill]] }
  0x46   : > { %s223_s5 = sadd.s32 %s1452_s13, %s1360_s10  ;;  %s1220_s16 = smov 1024  }
  0x47   : > { %s789_s26 = sshll.u32 %s223_s5, 7  ;;  %s217_s15 = scalar_lea.vmem [#allocation2], %s817_s18 }
  0x48   : > { %s826_s21 = scalar_select %p1352_p3, [#allocation0], [#allocation13] }
  0x49   : > { %s238_s30 = sshll.u32 %s217_s15, 4  ;;  %827 = sst [smem:[#allocation12]] (%p1352_p3), %s1220_s16  ;;  %s239_s30 = int_to_ptr.vmem [resolvable:$true] %s238_s30 }
  0x4a   : > { %s230_s27 = sld [smem:[%s826_s21]]   ;;  %s1221_s23 = smov 512  }
  0x4b   : > { %s225_s3 = scalar_lea.hbm %s1896_s0, %s789_s26  ;;  %828 = sst [smem:[#allocation12 + $0x1]] (%p1352_p3), %s1221_s23 }
  0x4c   : > { %s1222_s10 = smov 4   ;;  %s1223_s5 = smov 128  }
  0x4d   : > { %829 = sst [smem:[#allocation12 + $0x2]] (%p1352_p3), %s1222_s10  ;;  %s1224_s24 = smov 8  }
  0x4e   : > { %830 = sst [smem:[#allocation12 + $0x3]] (%p1352_p3), %s1223_s5  ;;  %s214_s16 = scalar_lea.sflag [#allocation3], %s213_s25 }
  0x4f   : > { %831 = sst [smem:[#allocation12 + $0x4]] (%p1352_p3), %s1223_s5  ;;  %s1225_s26 = smov [#allocation11]  }
  0x50   : > { %832 = sst [smem:[#allocation12 + $0x5]] (%p1352_p3), %s1224_s24  ;;  %s790_s15 = sshll.u32 %s230_s27, 26 }
  0x51   : > { %s791_s18 = sadd.s32 134217728, %s790_s15  ;;  %s261_s21 = sand.u32 1, %s1218_s28  }
  0x52   : > { %833 = dma.general (%p1352_p3), %s225_s3, 1536, %s239_s30, %s214_s16, %s1225_s26, [#allocation12], %s791_s18, 0  }
  0x53   : > { %s263_s23 = sand.u32 1, %s1186_s20   ;;  %s274_s10 = sadd.s32 %s1452_s13, %s1943_s12 }
  0x54   : > { %s819_s4 = smul.u32 24, %s263_s23  ;;  %s794_s5 = sshll.u32 %s274_s10, 7 }
  0x55   : > { %s1482_s27 = scalar_lea.hbm %s1839_s1, %s794_s5  ;;  %s289_s30 = sand.u32 1, %s1174_s17  }
  0x56   : > { %s265_s3 = scalar_lea.vmem [#allocation5], %s819_s4  ;;  %s1487_s25 = scalar_lea.sflag [#allocation6], %s261_s21 }
  0x57   : > { %s277_s9 = sshll.u32 %s265_s3, 4  ;;  %s976_s24 = scalar_lea.hbm %s1482_s27, 384  ;;  %s1484_s9 = int_to_ptr.vmem [resolvable:$true] %s277_s9 }
  0x58   : > { %p977_p1 = scmp.ne.s32.totalorder %s1482_s27, %s976_s24  ;;  %s980_s7 = scalar_lea.hbm %s1839_s1, 6144 }
  0x59   : > { %p981_p10 = scmp.lt.u32.totalorder %s1482_s27, %s1839_s1  ;;  %p982_p11 = scmp.lt.u32.totalorder %s980_s7, %s976_s24 }
  0x5a   : > { %p978_p3 = pnand %p977_p1, %p1392_p13  ;;  %p984_p8 = scmp.lt.u32.totalorder %s976_s24, %s1482_s27 }
  0x5b   : > { %p983_p4 = por %p982_p11, %p981_p10 }
  0x5c   : > { %p979_p0 = pneg %p978_p3 }
  0x5d   : > { %p985_p2 = por %p984_p8, %p983_p4 }
  0x5f   : > { %p986_p6 = pnand %p985_p2, %p979_p0 }
  0x61   : > { %989 = shalt.err (!%p986_p6)
}
  0x62   : > { %s990_s16 = scalar_lea.vmem %s1484_s9, 384  ;;  %s1226_s26 = smov [#allocation5]  }
  0x63   : > { %p991_p1 = scmp.ne.s32.totalorder %s1484_s9, %s990_s16  ;;  %s994_s21 = sshll.u32 %s1226_s26, 4  ;;  %s995_s21 = int_to_ptr.vmem [resolvable:$false] %s994_s21 }
  0x64   : > { %s996_s23 = scalar_lea.vmem %s995_s21, 768  ;;  %p997_p7 = scmp.lt.s32.totalorder %s1484_s9, %s995_s21 }
  0x65   : > { %p992_p3 = pnand %p991_p1, %p1392_p13  ;;  %p998_p5 = scmp.lt.s32.totalorder %s996_s23, %s990_s16 }
  0x67   : > { %p993_p9 = pneg %p992_p3  ;;  %p999_p10 = por %p998_p5, %p997_p7 }
  0x69   : > { %p1000_p11 = pnand %p999_p10, %p993_p9 }
  0x6b   : > { %1003 = shalt.err (!%p1000_p11)
}
  0x6c   : > { %s1227_s4 = smov 1024   ;;  %s1228_s10 = smov 128  }
  0x6d   : > { %s1229_s5 = smov 8   ;;  %s821_s3 = smul.u32 24, %s289_s30 }
  0x6e   : > { %834 = dma.hbm_to_vmem [thread:$0]  (%p1392_p13), %s1482_s27, 384, %s1484_s9, %s1487_s25, %s1227_s4, %s1228_s10, %s1229_s5  }
  0x6f   : > { %s300_s24 = sadd.s32 %s1452_s13, %s1947_s6  ;;  %s291_s18 = scalar_lea.vmem [#allocation7], %s821_s3 }
  0x70   : > { %s796_s12 = sshll.u32 %s300_s24, 7  ;;  %s303_s16 = sshll.u32 %s291_s18, 4  ;;  %s1523_s16 = int_to_ptr.vmem [resolvable:$true] %s303_s16 }
  0x71   : > { %s1521_s15 = scalar_lea.hbm %s1840_s2, %s796_s12  ;;  %s1008_s27 = scalar_lea.hbm %s1840_s2, 6144 }
  0x72   : > { %s1004_s8 = scalar_lea.hbm %s1521_s15, 384  ;;  %p1009_p9 = scmp.lt.u32.totalorder %s1521_s15, %s1840_s2 }
  0x73   : > { %p1005_p5 = scmp.ne.s32.totalorder %s1521_s15, %s1004_s8  ;;  %p1010_p0 = scmp.lt.u32.totalorder %s1008_s27, %s1004_s8 }
  0x74   : > { %p1012_p8 = scmp.lt.u32.totalorder %s1004_s8, %s1521_s15 }
  0x75   : > { %p1006_p7 = pnand %p1005_p5, %p1417_p12  ;;  %p1011_p4 = por %p1010_p0, %p1009_p9 }
  0x77   : > { %p1007_p13 = pneg %p1006_p7  ;;  %p1013_p2 = por %p1012_p8, %p1011_p4 }
  0x79   : > { %p1014_p6 = pnand %p1013_p2, %p1007_p13 }
  0x7b   : > { %1017 = shalt.err (!%p1014_p6)
}
  0x7c   : > { %s1018_s26 = scalar_lea.vmem %s1523_s16, 384  ;;  %s1230_s21 = smov [#allocation7]  }
  0x7d   : > { %p1019_p1 = scmp.ne.s32.totalorder %s1523_s16, %s1018_s26  ;;  %s1022_s23 = sshll.u32 %s1230_s21, 4  ;;  %s1023_s23 = int_to_ptr.vmem [resolvable:$false] %s1022_s23 }
  0x7e   : > { %s1024_s3 = scalar_lea.vmem %s1023_s23, 768  ;;  %p1025_p11 = scmp.lt.s32.totalorder %s1523_s16, %s1023_s23 }
  0x7f   : > { %p1020_p3 = pnand %p1019_p1, %p1417_p12  ;;  %p1026_p5 = scmp.lt.s32.totalorder %s1024_s3, %s1018_s26 }
  0x81   : > { %p1021_p10 = pneg %p1020_p3  ;;  %p1027_p7 = por %p1026_p5, %p1025_p11 }
  0x83   : > { %p1028_p9 = pnand %p1027_p7, %p1021_p10 }
  0x85   : > { %1031 = shalt.err (!%p1028_p9)
}
  0x86   : > { %835 = dma.hbm_to_vmem [thread:$0]  (%p1417_p12), %s1521_s15, 384, %s1523_s16, %s1487_s25, %s1227_s4, %s1228_s10, %s1229_s5  }
  0x87 PF: > { %p797_p13 = scmp.ge.s32.totalorder %s1218_s28, 1  ;;  %p311_p0 = scmp.lt.s32.totalorder %s1218_s28, 5 }
  0x89   : > { %p312_p4 = pnand %p797_p13, %p311_p0 }
  0x8a   : > { %s1553_s24 = sand.u32 (!%p312_p4), 1, %s1194_s22   ;;  %p1897_p8 = scmp.ne.s32.totalorder (!%p312_p4), %s1879_s11, 0 }
  0x8b   : > { %315 = sbr.rel (%p312_p4) target bundleno = 344 (0x158), region = 32  ;;  %s318_s12 = scalar_lea.sflag (!%p312_p4), [#allocation3], %s1553_s24 }
  0x8c   : > { %s823_s14 = smul.u32 (!%p312_p4), 96, %s1553_s24 }
  0x8e   : > { %s1557_s0 = scalar_lea.vmem (!%p312_p4), [#allocation2], %s823_s14 }
  0x92   : > { %1145 = dma.done.wait (%p1897_p8), %s318_s12, 1536  }
  0x93   : > { %1147 = vsyncadd (%p1897_p8), %s318_s12, 4294965760  ;;  %s1898_s25 = sld [smem:[#allocation29_spill]]  ;;  %s326_s4 = sand.u32 1, %s1333_s29  }
  0x94   : > { %s328_s10 = sand.u32 1, %s1182_s19   ;;  %s327_s7 = scalar_lea.sflag [#allocation6], %s326_s4 }
  0x95   : > { %s824_s5 = smul.u32 24, %s328_s10 }
  0x97   : > { %s1565_s15 = scalar_lea.vmem [#allocation5], %s824_s5 }
  0x99   : > { %p1899_p12 = scmp.ne.s32.totalorder %s1898_s25, 0 }
  0x9b   : > { %1149 = dma.done.wait (%p1899_p12), %s327_s7, 384  }
  0x9c   : > { %1151 = vsyncadd (%p1899_p12), %s327_s7, 4294966912  ;;  %s1900_s18 = sld [smem:[#allocation19_spill]]  ;;  %s1901_s16 = sld [smem:[#allocation31_spill]] }
  0xa2   : > { %s337_s8 = sand.u32 1, %s1900_s18   ;;  %p1902_p2 = scmp.ne.s32.totalorder %s1901_s16, 0 }
  0xa3   : > { %s825_s6 = smul.u32 24, %s337_s8 }
  0xa5   : > { %s1572_s11 = scalar_lea.vmem [#allocation7], %s825_s6 }
  0xa6   : > { %1153 = dma.done.wait (%p1902_p2), %s327_s7, 384  }
  0xa7   : > { %1155 = vsyncadd (%p1902_p2), %s327_s7, 4294966912  ;;  %v392_v0 = vld [vmem:[%s1557_s0 + $0x10] sm:$0xff]  ;;  %v438_v3 = vlaneseq  ;;  %v390_v7 = vld [vmem:[%s1557_s0] sm:$0xff]  ;;  %s798_s29 = sshll.u32 %s1553_s24, 5  ;;  %s1231_s13 = smov 1  }
  0xa8   : > { %v396_v1 = vld [vmem:[%s1557_s0 + $0x30] sm:$0xff]  ;;  %v410_v4 = vmul.f32 0.299, %v392_v0  ;;  %v394_v8 = vld [vmem:[%s1557_s0 + $0x20] sm:$0xff]  ;;  %v408_v11 = vmul.f32 0.299, %v390_v7 }
  0xa9   : > { %v400_v2 = vld [vmem:[%s1557_s0 + $0x50] sm:$0xff]  ;;  %v414_v5 = vmul.f32 0.587, %v396_v1  ;;  %v398_v9 = vld [vmem:[%s1557_s0 + $0x40] sm:$0xff]  ;;  %v412_v12 = vmul.f32 0.587, %v394_v8 }
  0xaa   : > { %v422_v6 = vmul.f32 0.114, %v400_v2  ;;  %v420_v13 = vmul.f32 0.114, %v398_v9  ;;  %v393_v14 = vld [vmem:[%s1557_s0 + $0x18] sm:$0xff]  ;;  %v1589_v17 = vshrl.u32 %v438_v3, 7 }
  0xab   : > { %v418_v10 = vadd.f32 %v414_v5, %v410_v4  ;;  %v397_v15 = vld [vmem:[%s1557_s0 + $0x38] sm:$0xff]  ;;  %v416_v19 = vadd.f32 %v412_v12, %v408_v11  ;;  %v411_v20 = vmul.f32 0.299, %v393_v14  ;;  %v391_v22 = vld [vmem:[%s1557_s0 + $0x8] sm:$0xff]  ;;  %s1603_s27 = scalar_lea.vmem [#allocation9], %s798_s29  ;;  %s1903_s9 = sld [smem:[#allocation22_spill]] }
  0xac   : > { %v401_v16 = vld [vmem:[%s1557_s0 + $0x58] sm:$0xff]  ;;  %v415_v21 = vmul.f32 0.587, %v397_v15  ;;  %v395_v23 = vld [vmem:[%s1557_s0 + $0x28] sm:$0xff]  ;;  %v409_v26 = vmul.f32 0.299, %v391_v22 }
  0xad   : > { %v1591_v18 = vadd.f32 %v422_v6, %v418_v10  ;;  %v423_v24 = vmul.f32 0.114, %v401_v16  ;;  %v399_v25 = vld [vmem:[%s1557_s0 + $0x48] sm:$0xff]  ;;  %v402_v27 = vld [vmem:[%s1565_s15] sm:$0xff]  ;;  %v1599_v28 = vadd.f32 %v420_v13, %v416_v19  ;;  %v413_v30 = vmul.f32 0.587, %v395_v23 }
  0xae   : > { %v419_v29 = vadd.f32 %v415_v21, %v411_v20  ;;  %v421_v31 = vmul.f32 0.114, %v399_v25  ;;  %v403_v32 = vld [vmem:[%s1565_s15 + $0x8] sm:$0xff]  ;;  %v404_v33 = vld [vmem:[%s1565_s15 + $0x10] sm:$0xff]  ;;  %v428_v34 = vmul.f32 0.299, %v402_v27 }
  0xaf   : > { %491 = vrot.lane.b32.xlu1 %v1591_v18, %s1231_s13  ;;  %565 = vst [vmem:[%s1603_s27 + $0x10] sm:$0xff] %v1591_v18  ;;  %v429_v35 = vmul.f32 0.587, %v403_v32  ;;  %487 = vrot.lane.b32.xlu0 %v1599_v28, %s1231_s13  ;;  %v417_v37 = vadd.f32 %v413_v30, %v409_v26  ;;  %v449_v38 = vrot.slane %v1599_v28, 7  ;;  %563 = vst [vmem:[%s1603_s27] sm:$0xff] %v1599_v28  ;;  %v431_v39 = vmul.f32 0.114, %v404_v33 }
  0xb0   : > { %v1611_v36 = vadd.f32 %v423_v24, %v419_v29  ;;  %v405_v40 = vld [vmem:[%s1572_s11] sm:$0xff]  ;;  %v406_v41 = vld [vmem:[%s1572_s11 + $0x8] sm:$0xff]  ;;  %v407_v42 = vld [vmem:[%s1572_s11 + $0x10] sm:$0xff]  ;;  %vm453_vm0 = vcmp.lt.s32.totalorder %v1589_v17, 1  ;;  %v472_v43 = vrot.slane %v1591_v18, 1  ;;  %v460_v45 = vsub.s32 7, %v1589_v17 }
  0xb1   : > { %v430_v44 = vadd.f32 %v429_v35, %v428_v34  ;;  %v1624_v46 = vadd.f32 %v421_v31, %v417_v37  ;;  %v470_v48 = vrot.slane %v1599_v28, 1  ;;  %v433_v49 = vmul.f32 0.299, %v405_v40  ;;  %s1904_s30 = sld [smem:[#allocation23_spill]]  ;;  %s606_s26 = sshll.u32 %s1603_s27, 4  ;;  %s1667_s26 = int_to_ptr.vmem [resolvable:$true] %s606_s26 }
  0xb2   : > { %566 = vst [vmem:[%s1603_s27 + $0x18] sm:$0xff] %v1611_v36  ;;  %v452_v47 = vrot.slane %v1611_v36, 7  ;;  %vm474_vm1 = vcmp.lt.s32.totalorder %v1589_v17, 7  ;;  %v434_v51 = vmul.f32 0.587, %v406_v41  ;;  %vm445_vm2 = vcmp.eq.s32.totalorder %v1589_v17, 0 }
  0xb3   : > { %493 = vrot.lane.b32.xlu1 %v1611_v36, %s1231_s13  ;;  %v432_v50 = vadd.f32 %v431_v39, %v430_v44  ;;  %v436_v52 = vmul.f32 0.114, %v407_v42  ;;  %489 = vrot.lane.b32.xlu0 %v1624_v46, %s1231_s13  ;;  %v450_v53 = vrot.slane %v1624_v46, 7  ;;  %v471_v54 = vrot.slane %v1624_v46, 1  ;;  %564 = vst [vmem:[%s1603_s27 + $0x8] sm:$0xff] %v1624_v46  ;;  %s803_s21 = sshll.u32 %s1903_s9, 2 }
  0xb4   : > { %v457_v55 = vsel %vm453_vm0, %v452_v47, %v449_v38  ;;  %v435_v57 = vadd.f32 %v434_v51, %v433_v49  ;;  %v1642_v58 = vadd.s32 24, %v1589_v17  ;;  %v451_v59 = vrot.slane %v1591_v18, 7  ;;  %s1232_s3 = smov 127   ;;  %s1905_s0 = sld [smem:[#allocation32_spill]] }
  0xb5   : > { %v461_v56 = vrot.slane %v432_v50, %v460_v45  ;;  %v456_v60 = vsel %vm453_vm0, %v449_v38, %v450_v53  ;;  %v476_v61 = vsel %vm474_vm1, %v471_v54, %v472_v43  ;;  %v477_v62 = vsel %vm474_vm1, %v470_v48, %v471_v54  ;;  %s1906_s10 = sld [smem:[#allocation37_spill]]  ;;  %s573_s7 = scalar_lea.sflag [#allocation10], %s1553_s24 }
  0xb6   : > { %v473_v63 = vrot.slane %v1611_v36, 1  ;;  %v1658_v0 = vadd.f32 %v476_v61, %v456_v60  ;;  %v437_v2 = vadd.f32 %v436_v52, %v435_v57  ;;  %v454_v4 = vsel %vm453_vm0, %v451_v59, %v452_v47  ;;  %s1032_s15 = scalar_lea.vmem %s1667_s26, 512  ;;  %s1233_s18 = smov [#allocation9]  }
  0xb7   : > { %s804_s23 = sshll.u32 %s1904_s30, 3  ;;  %497 = vrot.lane.b32.xlu1 %v1624_v46, %s1232_s3  ;;  %v462_v1 = vsel %vm445_vm2, %v461_v56, %v457_v55  ;;  %495 = vrot.lane.b32.xlu0 %v1599_v28, %s1232_s3  ;;  %v481_v6 = vsub.s32 0, %v1589_v17  ;;  %vm469_vm3 = vcmp.eq.s32.totalorder %v1642_v58, 31  ;;  %v455_v8 = vsel %vm453_vm0, %v450_v53, %v451_v59  ;;  %p1033_p6 = scmp.ne.s32.totalorder %s1667_s26, %s1032_s15 }
  0xb8   : > { %s1656_s14 = sadd.s32 %s804_s23, %s803_s21  ;;  %v1669_v5 = vadd.f32 %v477_v62, %v462_v1  ;;  %v478_v7 = vsel %vm474_vm1, %v473_v63, %v470_v48  ;;  %v475_v9 = vsel %vm474_vm1, %v472_v43, %v473_v63  ;;  %s1036_s16 = sshll.u32 %s1233_s18, 4  ;;  %s1037_s16 = int_to_ptr.vmem [resolvable:$false] %s1036_s16 }
  0xb9   : > { %s805_s12 = sshll.u32 %s1656_s14, 7  ;;  %v482_v10 = vrot.slane %v437_v2, %v481_v6  ;;  %v1681_v11 = vadd.f32 %v475_v9, %v455_v8  ;;  %s1038_s8 = scalar_lea.vmem %s1037_s16, 1024 }
  0xba   : > { %p1907_p1 = scmp.ne.s32.totalorder %s1905_s0, 0  ;;  %p1039_p11 = scmp.lt.s32.totalorder %s1667_s26, %s1037_s16 }
  0xbb   : > { %501 = vrot.lane.b32.xlu1 %v1611_v36, %s1232_s3  ;;  %s1688_s5 = scalar_lea.hbm %s1906_s10, %s805_s12  ;;  %p1040_p5 = scmp.lt.s32.totalorder %s1038_s8, %s1032_s15 }
  0xbc   : > { %p1034_p3 = pnand %p1033_p6, %p1907_p1 }
  0xbd   : > { %p1041_p7 = por %p1040_p5, %p1039_p11 }
  0xbe   : > { %p1035_p10 = pneg %p1034_p3 }
  0xc0   : > { %p1042_p9 = pnand %p1041_p7, %p1035_p10 }
  0xc2   : > { %1045 = shalt.err (!%p1042_p9)
}
  0xc3   : > { %s1046_s6 = scalar_lea.hbm %s1688_s5, 512  ;;  %s1050_s27 = scalar_lea.hbm %s1906_s10, 2048 }
  0xc4   : > { %p1047_p13 = scmp.ne.s32.totalorder %s1688_s5, %s1046_s6  ;;  %p1051_p8 = scmp.lt.u32.totalorder %s1688_s5, %s1906_s10 }
  0xc5   : > { %p1052_p12 = scmp.lt.u32.totalorder %s1050_s27, %s1046_s6  ;;  %p1054_p6 = scmp.lt.u32.totalorder %s1046_s6, %s1688_s5 }
  0xc6   : > { %p1048_p0 = pnand %p1047_p13, %p1907_p1 }
  0xc7   : > { %p1053_p2 = por %p1052_p12, %p1051_p8 }
  0xc8   : > { %p1049_p4 = pneg %p1048_p0 }
  0xc9   : > { %p1055_p3 = por %p1054_p6, %p1053_p2 }
  0xcb   : > { %p1056_p10 = pnand %p1055_p3, %p1049_p4 }
  0xcd   : > { %1059 = shalt.err (!%p1056_p10)
}
  0xce   : > { %s1234_s23 = smov 128   ;;  %s1235_s25 = smov 8   ;;  %499 = vrot.lane.b32.xlu0 %v1591_v18, %s1232_s3  ;;  %v486_v12 = vsel %vm469_vm3, %v482_v10, %v478_v7  ;;  %v440_v14 = vadd.s32 8, %v1589_v17  ;;  %v444_v20 = vand.u32 127, %v438_v3  ;;  %v441_v23 = vadd.s32 16, %v1589_v17 }
  0xcf   : > { %840 = dma.vmem_to_hbm [thread:$0]  (%p1907_p1), %s1667_s26, 512, %s1688_s5, %s573_s7, %s1234_s23, %s1234_s23, %s1235_s25   ;;  %v510_v13 = vadd.f32 %v486_v12, %v454_v4  ;;  %v516_v30 = vmul.f32 4.0, %v1624_v46  ;;  %v515_v31 = vmul.f32 4.0, %v1599_v28  ;;  %v518_v39 = vmul.f32 4.0, %v1611_v36 }
  0xd0   : > { %s800_s4 = sshll.u32 %s1903_s9, 5  ;;  %vm541_vm7 = vcmp.ge.s32.totalorder %v444_v20, 1  ;;  %vm546_vm11 = vcmp.lt.s32.totalorder %v444_v20, 63  ;;  %v517_v40 = vmul.f32 4.0, %v1591_v18  ;;  %s371_s9 = scalar_lea.vmem [#allocation8], %s798_s29 }
  0xd1   : > { %v524_v15 = vstv %s800_s4  ;;  %s588_s26 = sshll.u32 %s371_s9, 4  ;;  %s1910_s5 = sld [smem:[#allocation36_spill]]  ;;  %s1750_s26 = int_to_ptr.vmem [resolvable:$true] %s588_s26 }
  0xd2   : > { %v526_v16 = vadd.s32 %v524_v15, %v440_v14  ;;  %v525_v22 = vadd.s32 %v524_v15, %v1589_v17  ;;  %v528_v25 = vadd.s32 %v524_v15, %v1642_v58  ;;  %v527_v27 = vadd.s32 %v524_v15, %v441_v23  ;;  %s568_s15 = scalar_lea.sflag [#allocation4], %s1553_s24  ;;  %s1060_s18 = scalar_lea.vmem %s1750_s26, 512 }
  0xd3   : > { %p1061_p11 = scmp.ne.s32.totalorder %s1750_s26, %s1060_s18  ;;  %s1236_s16 = smov [#allocation8]  }
  0xd4   : > { %vm530_vm4 = vcmp.ge.s32.totalorder %v526_v16, 1  ;;  %vm534_vm5 = vcmp.lt.s32.totalorder %v526_v16, 63  ;;  %vm529_vm8 = vcmp.ge.s32.totalorder %v525_v22, 1  ;;  %vm533_vm9 = vcmp.lt.s32.totalorder %v525_v22, 63  ;;  %s1064_s8 = sshll.u32 %s1236_s16, 4  ;;  %s1065_s8 = int_to_ptr.vmem [resolvable:$false] %s1064_s8 }
  0xd5   : > { %vm538_vm6 = vmand %vm530_vm4, %vm534_vm5  ;;  %vm532_vm12 = vcmp.ge.s32.totalorder %v528_v25, 1  ;;  %vm536_vm13 = vcmp.lt.s32.totalorder %v528_v25, 63  ;;  %vm531_vm0 = vcmp.ge.s32.totalorder %v527_v27, 1  ;;  %vm535_vm1 = vcmp.lt.s32.totalorder %v527_v27, 63  ;;  %p1062_p5 = pnand %p1061_p11, %p1907_p1  ;;  %s1066_s6 = scalar_lea.vmem %s1065_s8, 1024 }
  0xd6   : > { %vm543_vm10 = vmand %vm538_vm6, %vm541_vm7  ;;  %p1067_p9 = scmp.lt.s32.totalorder %s1750_s26, %s1065_s8  ;;  %p1068_p13 = scmp.lt.s32.totalorder %s1066_s6, %s1060_s18 }
  0xd7   : > { %vm537_vm14 = vmand %vm529_vm8, %vm533_vm9  ;;  %s1757_s7 = scalar_lea.hbm %s1910_s5, %s805_s12  ;;  %p1063_p7 = pneg %p1062_p5 }
  0xd8   : > { %vm1731_vm15 = vmand %vm543_vm10, %vm546_vm11  ;;  %p1069_p0 = por %p1068_p13, %p1067_p9 }
  0xd9   : > { %vm540_vm2 = vmand %vm532_vm12, %vm536_vm13 }
  0xda   : > { %vm542_vm3 = vmand %vm537_vm14, %vm541_vm7  ;;  %p1070_p4 = pnand %p1069_p0, %p1063_p7 }
  0xdb   : > { %vm539_vm4 = vmand %vm531_vm0, %vm535_vm1 }
  0xdc   : > { %vm545_vm5 = vmand %vm540_vm2, %vm541_vm7 }
  0xdd   : > { %vm547_vm6 = vmand %vm542_vm3, %vm546_vm11 }
  0xde   : > { %vm544_vm8 = vmand %vm539_vm4, %vm541_vm7 }
  0xdf   : > { %vm550_vm9 = vmand %vm545_vm5, %vm546_vm11 }
  0xe0   : > { %vm549_vm10 = vmand %vm544_vm8, %vm546_vm11 }
 0x121   : > { %v492_v19 = vpop.permute.xlu1 %491  ;;  %v488_v21 = vpop.permute.xlu0 %487 }
 0x125   : > { %v494_v24 = vpop.permute.xlu1 %493  ;;  %v490_v26 = vpop.permute.xlu0 %489 }
 0x129   : > { %v498_v3 = vpop.permute.xlu1 %497  ;;  %v496_v17 = vpop.permute.xlu0 %495 }
 0x12a   : > { %v504_v29 = vadd.f32 %v498_v3, %v490_v26  ;;  %v503_v34 = vadd.f32 %v496_v17, %v488_v21 }
 0x12c   : > { %v512_v33 = vadd.f32 %v1658_v0, %v504_v29  ;;  %v511_v38 = vadd.f32 %v1669_v5, %v503_v34 }
 0x12d   : > { %v502_v35 = vpop.permute.xlu1 %501 }
 0x12e   : > { %v520_v37 = vsub.f32 %v512_v33, %v516_v30  ;;  %v506_v28 = vadd.f32 %v502_v35, %v494_v24  ;;  %v519_v43 = vsub.f32 %v511_v38, %v515_v31 }
 0x130   : > { %v552_v42 = vmul.f32 %v520_v37, %v520_v37  ;;  %v514_v44 = vadd.f32 %v510_v13, %v506_v28  ;;  %v551_v47 = vmul.f32 %v519_v43, %v519_v43 }
 0x132   : > { %v556_v46 = vsel %vm1731_vm15, %v552_v42, 0.0  ;;  %v522_v48 = vsub.f32 %v514_v44, %v518_v39  ;;  %v555_v36 = vsel %vm547_vm6, %v551_v47, 0.0 }
 0x133   : > { %560 = vst [vmem:[%s371_s9 + $0x8] sm:$0xff] %v556_v46  ;;  %559 = vst [vmem:[%s371_s9] sm:$0xff] %v555_v36 }
 0x134   : > { %v554_v49 = vmul.f32 %v522_v48, %v522_v48 }
 0x136   : > { %v558_v51 = vsel %vm550_vm9, %v554_v49, 0.0 }
 0x137   : > { %562 = vst [vmem:[%s371_s9 + $0x18] sm:$0xff] %v558_v51 }
 0x140   : > { %v500_v41 = vpop.permute.xlu0 %499 }
 0x141   : > { %v505_v45 = vadd.f32 %v500_v41, %v492_v19 }
 0x143   : > { %v513_v18 = vadd.f32 %v1681_v11, %v505_v45 }
 0x145   : > { %v521_v50 = vsub.f32 %v513_v18, %v517_v40 }
 0x147   : > { %v553_v52 = vmul.f32 %v521_v50, %v521_v50 }
 0x149   : > { %v557_v53 = vsel %vm549_vm10, %v553_v52, 0.0 }
 0x14a   : > { %561 = vst [vmem:[%s371_s9 + $0x10] sm:$0xff] %v557_v53 }
 0x14b   : > { %1073 = shalt.err (!%p1070_p4)
}
 0x14c   : > { %s1074_s14 = scalar_lea.hbm %s1757_s7, 512  ;;  %s1078_s13 = scalar_lea.hbm %s1910_s5, 2048 }
 0x14d   : > { %p1075_p8 = scmp.ne.s32.totalorder %s1757_s7, %s1074_s14  ;;  %p1079_p6 = scmp.lt.u32.totalorder %s1757_s7, %s1910_s5 }
 0x14e   : > { %p1080_p3 = scmp.lt.u32.totalorder %s1078_s13, %s1074_s14  ;;  %p1082_p11 = scmp.lt.u32.totalorder %s1074_s14, %s1757_s7 }
 0x14f   : > { %p1076_p12 = pnand %p1075_p8, %p1907_p1 }
 0x150   : > { %p1081_p10 = por %p1080_p3, %p1079_p6 }
 0x151   : > { %p1077_p2 = pneg %p1076_p12 }
 0x152   : > { %p1083_p5 = por %p1082_p11, %p1081_p10 }
 0x154   : > { %p1084_p7 = pnand %p1083_p5, %p1077_p2 }
 0x156   : > { %1087 = shalt.err (!%p1084_p7)
}
 0x157   : > { %839 = dma.vmem_to_hbm [thread:$0]  (%p1907_p1), %s1750_s26, 512, %s1757_s7, %s568_s15, %s1234_s23, %s1234_s23, %s1235_s25  }
 0x158 PF: > { %s1911_s21 = sld [smem:[#allocation20_spill]]  ;;  %s1912_s4 = sld [smem:[#allocation33_spill]] }
 0x159   : > { %p850_p9 = scmp.ge.s32.totalorder %s1218_s28, 2 }
 0x15e   : > { %s621_s9 = sand.u32 1, %s1911_s21   ;;  %p1913_p13 = scmp.ne.s32.totalorder %s1912_s4, 0 }
 0x15f   : > { %s622_s29 = scalar_lea.sflag [#allocation4], %s621_s9 }
 0x160   : > { %p844_p0 = pnand %p850_p9, %p1913_p13 }
 0x162   : > { %1157 = dma.done.wait (!%p844_p0), %s622_s29, 512  }
 0x163   : > { %1159 = vsyncadd (!%p844_p0), %s622_s29, 4294966784  ;;  %s631_s0 = scalar_lea.sflag [#allocation10], %s621_s9 }
 0x164   : > { %1161 = dma.done.wait (!%p844_p0), %s631_s0, 512  }
 0x165   : > { %1163 = vsyncadd (!%p844_p0), %s631_s0, 4294966784  ;;  %s27_s28 = sadd.s32 1, %s1218_s28   ;;  %s1915_s15 = sld [smem:[#allocation19_spill]] }
 0x166   : > { %p1791_p4 = scmp.ge.s32.totalorder %s27_s28, 6   ;;  %s1916_s23 = sld [smem:[#allocation34_spill]] }
 0x167   : > { %s1917_s25 = sld [smem:[#allocation30_spill]]  ;;  %s1918_s26 = sld [smem:[#allocation21_spill]] }
 0x168   : > { %s1919_s3 = sld [smem:[#allocation28_spill]]  ;;  %s1920_s7 = sld [smem:[#allocation24_spill]] }
 0x169   : > { %s1921_s8 = sld [smem:[#allocation25_spill]]  ;;  %s1922_s6 = sld [smem:[#allocation26_spill]] }
 0x16a   : > { %s1923_s27 = sld [smem:[#allocation27_spill]]  ;;  %s1925_s16 = smov %s1174_s17 }
 0x16b   : > { %s1927_s18 = smov %s1182_s19  ;;  %s1928_s19 = smov %s1186_s20 }
 0x16c   : > { %s1926_s17 = smov %s1916_s23  ;;  %s1930_s21 = smov %s1194_s22 }
 0x16d   : > { %s1929_s20 = smov %s1917_s25  ;;  %s1931_s22 = smov %s1918_s26 }
 0x16e   : > { %s1932_s23 = smov %s1919_s3  ;;  %s1933_s24 = smov %s1920_s7 }
 0x16f   : > { %s1934_s25 = smov %s1921_s8  ;;  %s1935_s26 = smov %s1922_s6 }
 0x170   :  { %26 = sbr.rel (!%p1791_p4) target bundleno = 18 (0x12), region = 123 }
 0x177   :  { %636 = vsyncpa [#allocation3], 1 }
 0x178   :  { %638 = vsyncpa [#allocation3 + $0x1], 1 }
 0x179   :  { %639 = vsyncpa [#allocation6], 1 }
 0x17a   :  { %641 = vsyncpa [#allocation6 + $0x1], 1 }
 0x17b   :  { %642 = vsyncpa [#allocation4], 1 }
 0x17c   :  { %644 = vsyncpa [#allocation4 + $0x1], 1 }
 0x17d   :  { %645 = vsyncpa [#allocation10], 1 }
 0x17e   :  { %647 = vsyncpa [#allocation10 + $0x1], 1 }

</bundles_post_ra>
